<compile_context>
chip_gen: v7x
topology: tpu7x:2x2x1
jax: 0.10.0
libtpu: 0.0.40
codegen_flags: <defaults>
</compile_context>

<pallas_src>
import functools

import jax
import jax.numpy as jnp
from jax.experimental import pallas as pl
from jax.experimental.pallas import tpu as pltpu

RAYDROP_CONST = 0.0          # value rays are "dropped" to (registered buffer)
GUMBEL_TEMPERATURE = 1.0     # kept for API fidelity; cancels out of hard mask


def raydrop_kernel(logit_ref, noise_ref, img_ref, mask_ref, out_ref,
                   *, raydrop_const):
    """Elementwise: keep = (logit + logistic_noise) > 0; select image/const."""
    z = logit_ref[...] + noise_ref[...]          # (Nb, 1, THW) f32
    keep = z > 0.0                               # hard straight-through mask
    mask_ref[...] = keep.astype(mask_ref.dtype)
    # lerp(image, const, 1 - mask) == where(mask, image, const), broadcast over C
    out_ref[...] = jnp.where(keep, img_ref[...], raydrop_const).astype(out_ref.dtype)


def _pick_tiles(N, C, HW, itemsize=4, target_bytes=4 << 20):
    """Choose (batch_block, hw_tile) keeping one grid step's live VMEM modest.

    Live VMEM per step ~= 2 (double buffer) * (image_in + logit + noise +
    mask_out + image_out) = 2 * (2C + 3) * nb * thw * itemsize.
    """
    def step_bytes(nb, thw):
        return 2 * (2 * C + 3) * nb * thw * itemsize

    # Tile along the flattened HW axis only if it can stay a multiple of 128.
    thw = HW
    if HW % 128 == 0 and step_bytes(1, HW) > target_bytes:
        best = 128
        t = 128
        while t <= HW:
            if HW % t == 0 and step_bytes(1, t) <= target_bytes:
                best = t
            t += 128
        thw = best

    # Pack as many batch elements per step as fit (helps tiny images).
    nb = 1
    for cand in range(1, N + 1):
        if N % cand == 0 and step_bytes(cand, thw) <= target_bytes:
            nb = cand
    return nb, thw


def raydrop_forward(h, key, *, raydrop_const=RAYDROP_CONST,
                    temperature=GUMBEL_TEMPERATURE):
    assert isinstance(h, dict) and "image" in h and "raydrop_logit" in h
    assert float(temperature) > 0.0
    image = h["image"]
    logit = h["raydrop_logit"]
    N, C, H, W = image.shape
    assert logit.shape == (N, 1, H, W)
    HW = H * W

    # Lane-dense layout: flatten (H, W) -> HW (free reshape on contiguous data).
    image_f = image.reshape(N, C, HW)
    logit_f = logit.reshape(N, 1, HW).astype(jnp.float32)
    # g1 - g2 of two Gumbels == standard Logistic; temperature cancels in the
    # hard (> 0) forward value.
    noise = jax.random.logistic(key, (N, 1, HW), dtype=jnp.float32)

    nb, thw = _pick_tiles(N, C, HW, itemsize=image.dtype.itemsize)
    grid = (N // nb, HW // thw)

    kernel = functools.partial(raydrop_kernel, raydrop_const=float(raydrop_const))

    mask_f, out_f = pl.pallas_call(
        kernel,
        out_shape=(
            jax.ShapeDtypeStruct((N, 1, HW), jnp.float32),
            jax.ShapeDtypeStruct((N, C, HW), image.dtype),
        ),
        grid=grid,
        in_specs=[
            pl.BlockSpec((nb, 1, thw), lambda i, j: (i, 0, j)),   # logit
            pl.BlockSpec((nb, 1, thw), lambda i, j: (i, 0, j)),   # logistic noise
            pl.BlockSpec((nb, C, thw), lambda i, j: (i, 0, j)),   # image
        ],
        out_specs=(
            pl.BlockSpec((nb, 1, thw), lambda i, j: (i, 0, j)),   # mask
            pl.BlockSpec((nb, C, thw), lambda i, j: (i, 0, j)),   # image'
        ),
        compiler_params=pltpu.CompilerParams(
            dimension_semantics=("parallel", "parallel"),
            vmem_limit_bytes=32 * 1024 * 1024,
        ),
    )(logit_f, noise, image_f)

    out = dict(h)
    out["raydrop_mask"] = mask_f.reshape(N, 1, H, W)
    out["image_orig"] = image                    # zero-copy passthrough
    out["image"] = out_f.reshape(N, C, H, W)
    return out


if __name__ == "__main__":
    key = jax.random.PRNGKey(0)
    k_img, k_logit, k_noise = jax.random.split(key, 3)

    N, C, H, W = 2, 4, 16, 16
    image = jax.random.normal(k_img, (N, C, H, W), dtype=jnp.float32)
    logit = jax.random.normal(k_logit, (N, 1, H, W), dtype=jnp.float32)

    h = {"image": image, "raydrop_logit": logit}
    out = raydrop_forward(h, k_noise)

    jax.block_until_ready(out["raydrop_mask"])
    jax.block_until_ready(out["image"])

    mask = out["raydrop_mask"]
    assert mask.shape == (N, 1, H, W)
    # mask is binary (straight-through hard forward value)
    assert bool(jnp.all((mask == 0.0) | (mask == 1.0)))
    # image == lerp(image, raydrop_const, 1 - mask) with channel broadcast
    expected = image * mask + RAYDROP_CONST * (1.0 - mask)
    assert bool(jnp.allclose(out["image"], expected, atol=1e-6))
    assert bool(jnp.allclose(out["image_orig"], image))

    print("KERNEL_OK")
</pallas_src>

<mosaic_0001>
module attributes {stable_mosaic.version = 11 : i64} {
  func.func @raydrop_kernel(%arg0: i32, %arg1: i32, %arg2: memref<2x1x256xf32, #tpu.memory_space<vmem>>, %arg3: memref<2x1x256xf32, #tpu.memory_space<vmem>>, %arg4: memref<2x4x256xf32, #tpu.memory_space<vmem>>, %arg5: memref<2x1x256xf32, #tpu.memory_space<vmem>>, %arg6: memref<2x4x256xf32, #tpu.memory_space<vmem>>) attributes {dimension_semantics = [#tpu.dimension_semantics<parallel>, #tpu.dimension_semantics<parallel>], iteration_bounds = array<i64: 1, 1>, scalar_prefetch = 0 : i64, scratch_operands = 0 : i64, tpu.core_type = #tpu.core_type<tc>, window_params = [{transform_indices = @transform_0, window_bounds = array<i64: 2, 1, 256>}, {transform_indices = @transform_1, window_bounds = array<i64: 2, 1, 256>}, {transform_indices = @transform_2, window_bounds = array<i64: 2, 4, 256>}, {transform_indices = @transform_3, window_bounds = array<i64: 2, 1, 256>}, {transform_indices = @transform_4, window_bounds = array<i64: 2, 4, 256>}]} {
    %c0 = arith.constant 0 : index
    %c0_0 = arith.constant 0 : index
    %c0_1 = arith.constant 0 : index
    %0 = vector.load %arg2[%c0, %c0_0, %c0_1] : memref<2x1x256xf32, #tpu.memory_space<vmem>>, vector<2x1x256xf32>
    %c0_2 = arith.constant 0 : index
    %c0_3 = arith.constant 0 : index
    %c0_4 = arith.constant 0 : index
    %1 = vector.load %arg3[%c0_2, %c0_3, %c0_4] : memref<2x1x256xf32, #tpu.memory_space<vmem>>, vector<2x1x256xf32>
    %2 = arith.addf %0, %1 : vector<2x1x256xf32>
    %cst = arith.constant 0.000000e+00 : f32
    %3 = vector.broadcast %cst : f32 to vector<2x1x256xf32>
    %4 = arith.cmpf ogt, %2, %3 : vector<2x1x256xf32>
    %5 = arith.extui %4 : vector<2x1x256xi1> to vector<2x1x256xi32>
    %6 = arith.sitofp %5 : vector<2x1x256xi32> to vector<2x1x256xf32>
    %c0_5 = arith.constant 0 : index
    %c0_6 = arith.constant 0 : index
    %c0_7 = arith.constant 0 : index
    %7 = vector.load %arg5[%c0_5, %c0_6, %c0_7] : memref<2x1x256xf32, #tpu.memory_space<vmem>>, vector<2x1x256xf32>
    tpu.vector_store %arg5[%c0_5, %c0_6, %c0_7], %6 {strides = array<i32>} : memref<2x1x256xf32, #tpu.memory_space<vmem>>, vector<2x1x256xf32>,
    %c0_8 = arith.constant 0 : index
    %c0_9 = arith.constant 0 : index
    %c0_10 = arith.constant 0 : index
    %8 = vector.load %arg4[%c0_8, %c0_9, %c0_10] : memref<2x4x256xf32, #tpu.memory_space<vmem>>, vector<2x4x256xf32>
    %cst_11 = arith.constant 0.000000e+00 : f32
    %9 = vector.shape_cast %4 : vector<2x1x256xi1> to vector<2x1x256xi1>
    %10 = vector.broadcast %9 : vector<2x1x256xi1> to vector<2x4x256xi1>
    %11 = vector.broadcast %cst_11 : f32 to vector<2x4x256xf32>
    %12 = arith.select %10, %8, %11 : vector<2x4x256xi1>, vector<2x4x256xf32>
    %c0_12 = arith.constant 0 : index
    %c0_13 = arith.constant 0 : index
    %c0_14 = arith.constant 0 : index
    %13 = vector.load %arg6[%c0_12, %c0_13, %c0_14] : memref<2x4x256xf32, #tpu.memory_space<vmem>>, vector<2x4x256xf32>
    tpu.vector_store %arg6[%c0_12, %c0_13, %c0_14], %12 {strides = array<i32>} : memref<2x4x256xf32, #tpu.memory_space<vmem>>, vector<2x4x256xf32>,
    return
  }
  func.func @transform_0(%arg0: i32, %arg1: i32) -> (i32, i32, i32) {
    %c0_i32 = arith.constant 0 : i32
    %c0_i32_0 = arith.constant 0 : i32
    return %arg0, %c0_i32, %arg1 : i32, i32, i32
  }
  func.func @transform_1(%arg0: i32, %arg1: i32) -> (i32, i32, i32) {
    %c0_i32 = arith.constant 0 : i32
    %c0_i32_0 = arith.constant 0 : i32
    return %arg0, %c0_i32, %arg1 : i32, i32, i32
  }
  func.func @transform_2(%arg0: i32, %arg1: i32) -> (i32, i32, i32) {
    %c0_i32 = arith.constant 0 : i32
    %c0_i32_0 = arith.constant 0 : i32
    return %arg0, %c0_i32, %arg1 : i32, i32, i32
  }
  func.func @transform_3(%arg0: i32, %arg1: i32) -> (i32, i32, i32) {
    %c0_i32 = arith.constant 0 : i32
    %c0_i32_0 = arith.constant 0 : i32
    return %arg0, %c0_i32, %arg1 : i32, i32, i32
  }
  func.func @transform_4(%arg0: i32, %arg1: i32) -> (i32, i32, i32) {
    %c0_i32 = arith.constant 0 : i32
    %c0_i32_0 = arith.constant 0 : i32
    return %arg0, %c0_i32, %arg1 : i32, i32, i32
  }
}

</mosaic_0001>

<bundles_post_ra>
// kernel: tpu_custom_call.1
= control target key start
LH: loop header
LB: loop body
LE: loop exit
PB: predicated region body
PF: predicated region fallthrough
CT: control target
= control target key end

     0   :  { %10 = vsyncpa [#allocation3], 0  ;;  %s412_s0 = inlined_call_operand.hbm [shape: f32[2,1,256], index: 0, kind: input, shape index: {}]   ;;  %s413_s1 = inlined_call_operand.hbm [shape: f32[2,1,256], index: 1, kind: input, shape index: {}]   ;;  %s414_s2 = inlined_call_operand.hbm [shape: f32[2,4,256], index: 2, kind: input, shape index: {}]   ;;  %s415_s3 = inlined_call_operand.hbm [shape: f32[2,1,256], index: 3, kind: output, shape index: {0}]   ;;  %s416_s4 = inlined_call_operand.hbm [shape: f32[2,4,256], index: 4, kind: output, shape index: {1}]  }
   0x1   :  { %11 = vsyncpa [#allocation6], 0 }
   0x2   :  { %12 = vsyncpa [#allocation4], 0 }
   0x3   :  { %13 = vsyncpa [#allocation10], 0  ;;  %s286_s15 = smov [#allocation5]   ;;  %s287_s17 = smov [#allocation2]  }
   0x4   :  { %s31_s16 = sshll.u32 %s286_s15, 4  ;;  %s19_s18 = sshll.u32 %s287_s17, 4  ;;  %s32_s16 = int_to_ptr.vmem [resolvable:$true] %s31_s16  ;;  %s322_s18 = int_to_ptr.vmem [resolvable:$true] %s19_s18 }
   0x5   :  { %s168_s21 = scalar_lea.hbm %s413_s1, 64 }
   0x6   :  { %p169_p0 = scmp.ne.s32.totalorder %s413_s1, %s168_s21  ;;  %p172_p1 = scmp.lt.u32.totalorder %s168_s21, %s413_s1 }
   0x8   :  { %p174_p2 = pnand %p172_p1, %p169_p0 }
   0xa   :  { %177 = shalt.err (!%p174_p2)
}
   0xb   :  { %s178_s26 = scalar_lea.vmem %s32_s16, 64  ;;  %p183_p4 = scmp.lt.s32.totalorder %s32_s16, %s32_s16 }
   0xc   :  { %p179_p3 = scmp.ne.s32.totalorder %s32_s16, %s178_s26  ;;  %p184_p5 = scmp.lt.s32.totalorder %s178_s26, %s178_s26 }
   0xe   :  { %p185_p6 = por %p184_p5, %p183_p4 }
  0x10   :  { %p186_p7 = pnand %p185_p6, %p179_p3 }
  0x12   :  { %189 = shalt.err (!%p186_p7)
}
  0x13   :  { %s288_s27 = smov 32   ;;  %s289_s28 = smov 2  }
  0x14   :  { %37 = dma.hbm_to_vmem [thread:$0]  %s413_s1, 64, %s32_s16, [#allocation6], %s288_s27, %s288_s27, %s289_s28  }
  0x15   :  { %s190_s7 = scalar_lea.hbm %s412_s0, 64 }
  0x16   :  { %p191_p8 = scmp.ne.s32.totalorder %s412_s0, %s190_s7  ;;  %p194_p9 = scmp.lt.u32.totalorder %s190_s7, %s412_s0 }
  0x18   :  { %p196_p10 = pnand %p194_p9, %p191_p8 }
  0x1a   :  { %199 = shalt.err (!%p196_p10)
}
  0x1b   :  { %s200_s12 = scalar_lea.vmem %s322_s18, 64  ;;  %p205_p12 = scmp.lt.s32.totalorder %s322_s18, %s322_s18 }
  0x1c   :  { %p201_p11 = scmp.ne.s32.totalorder %s322_s18, %s200_s12  ;;  %p206_p13 = scmp.lt.s32.totalorder %s200_s12, %s200_s12 }
  0x1e   :  { %p207_p0 = por %p206_p13, %p205_p12 }
  0x20   :  { %p208_p1 = pnand %p207_p0, %p201_p11 }
  0x22   :  { %211 = shalt.err (!%p208_p1)
}
  0x23   :  { %25 = dma.hbm_to_vmem [thread:$0]  %s412_s0, 64, %s322_s18, [#allocation3], %s288_s27, %s288_s27, %s289_s28  }
  0x24   :  { %s290_s14 = smov [#allocation7]   ;;  %s212_s19 = scalar_lea.hbm %s414_s2, 256 }
  0x25   :  { %s43_s15 = sshll.u32 %s290_s14, 4  ;;  %p213_p2 = scmp.ne.s32.totalorder %s414_s2, %s212_s19  ;;  %s44_s15 = int_to_ptr.vmem [resolvable:$true] %s43_s15 }
  0x26   :  { %p216_p3 = scmp.lt.u32.totalorder %s212_s19, %s414_s2 }
  0x28   :  { %p218_p4 = pnand %p216_p3, %p213_p2 }
  0x2a   :  { %221 = shalt.err (!%p218_p4)
}
  0x2b   :  { %s222_s24 = scalar_lea.vmem %s44_s15, 256  ;;  %p227_p6 = scmp.lt.s32.totalorder %s44_s15, %s44_s15 }
  0x2c   :  { %p223_p5 = scmp.ne.s32.totalorder %s44_s15, %s222_s24  ;;  %p228_p7 = scmp.lt.s32.totalorder %s222_s24, %s222_s24 }
  0x2e   :  { %p229_p8 = por %p228_p7, %p227_p6 }
  0x30   :  { %p230_p9 = pnand %p229_p8, %p223_p5 }
  0x32   :  { %233 = shalt.err (!%p230_p9)
}
  0x33   :  { %s291_s0 = smov 128   ;;  %s292_s18 = smov 8  }
  0x34   :  { %49 = dma.hbm_to_vmem [thread:$0]  %s414_s2, 256, %s44_s15, [#allocation6], %s291_s0, %s291_s0, %s292_s18  }
  0x35   :  { %278 = dma.done.wait [#allocation3], 64  }
  0x36   :  { %279 = vsyncadd [#allocation3], 4294967232 }
  0x37   :  { %280 = dma.done.wait [#allocation6], 320  }
  0x38   :  { %281 = vsyncadd [#allocation6], 4294966976  ;;  %v71_v0 = vlaneseq  ;;  %s293_s29 = smov [#allocation8]   ;;  %v59_v2 = vld [vmem:[#allocation2] sm:$0x3]  ;;  %v77_v7 = vld [vmem:[#allocation7] sm:$0xff] }
  0x39   :  { %s124_s30 = sshll.u32 %s293_s29, 4  ;;  %v61_v3 = vld [vmem:[#allocation5] sm:$0x3]  ;;  %v60_v4 = vld [vmem:[#allocation2 + $0x2] sm:$0x3]  ;;  %v78_v10 = vld [vmem:[#allocation7 + $0x8] sm:$0xff]  ;;  %v101_v13 = vcombine.high %v77_v7, %v77_v7  ;;  %s125_s30 = int_to_ptr.vmem [resolvable:$true] %s124_s30 }
  0x3a   :  { %v80_v1 = vshrl.u32 %v71_v0, 7  ;;  %v63_v5 = vadd.f32 %v61_v3, %v59_v2  ;;  %v62_v6 = vld [vmem:[#allocation5 + $0x2] sm:$0x3]  ;;  %vm374_vm0 = vcmp.lt.s32.totalorder %v71_v0, 256  ;;  %v294_v14 = vmov 0   ;;  %s296_s2 = smov [#allocation9]   ;;  %p239_p11 = scmp.lt.s32.totalorder %s125_s30, %s125_s30 }
  0x3b   :  { %v64_v12 = vadd.f32 %v62_v6, %v60_v4  ;;  %v295_v16 = vmov 0.0   ;;  %v102_v18 = vcombine.high %v78_v10, %v78_v10  ;;  %s136_s5 = sshll.u32 %s296_s2, 4  ;;  %s234_s6 = scalar_lea.vmem %s125_s30, 64  ;;  %s137_s5 = int_to_ptr.vmem [resolvable:$true] %s136_s5 }
  0x3c   :  { %v81_v8 = vsub.s32 0, %v80_v1  ;;  %v85_v9 = vsub.s32 1, %v80_v1  ;;  %vm65_vm1 = vcmp.gt.f32.partialorder %v63_v5, 0.0  ;;  %p235_p10 = scmp.ne.s32.totalorder %s125_s30, %s234_s6  ;;  %p240_p12 = scmp.lt.s32.totalorder %s234_s6, %s234_s6 }
  0x3d   :  { %v67_v15 = vsel %vm65_vm1, 1, %v294_v14  ;;  %v153_v17 = vsel %vm65_vm1, 1.0, %v295_v16  ;;  %vm66_vm2 = vcmp.gt.f32.partialorder %v64_v12, 0.0 }
  0x3e   :  { %75 = vst.msk [vmem:[#allocation8] sm:$0x3] %vm374_vm0, %v153_v17  ;;  %v68_v19 = vsel %vm66_vm2, 1, %v294_v14  ;;  %v154_v20 = vsel %vm66_vm2, 1.0, %v295_v16  ;;  %v82_v21 = vrot.slane %v67_v15, %v81_v8  ;;  %v86_v22 = vrot.slane %v67_v15, %v85_v9  ;;  %p241_p13 = por %p240_p12, %p239_p11 }
  0x3f   :  { %76 = vst.msk [vmem:[#allocation8 + $0x2] sm:$0x3] %vm374_vm0, %v154_v20  ;;  %v90_v23 = vrot.slane %v68_v19, %v81_v8  ;;  %v94_v24 = vrot.slane %v68_v19, %v85_v9 }
  0x40   :  { %vm95_vm3 = vcmp.eq.s32.totalorder %v82_v21, 1  ;;  %vm96_vm4 = vcmp.eq.s32.totalorder %v86_v22, 1  ;;  %p242_p0 = pnand %p241_p13, %p235_p10 }
  0x42   :  { %245 = shalt.err (!%p242_p0)
}
  0x43   :  { %s246_s9 = scalar_lea.hbm %s415_s3, 64 }
  0x44   :  { %p247_p1 = scmp.ne.s32.totalorder %s415_s3, %s246_s9  ;;  %p250_p2 = scmp.lt.u32.totalorder %s246_s9, %s415_s3 }
  0x46   :  { %p252_p3 = pnand %p250_p2, %p247_p1 }
  0x48   :  { %255 = shalt.err (!%p252_p3)
}
  0x49   :  { %130 = dma.vmem_to_hbm [thread:$0]  %s125_s30, 64, %s415_s3, [#allocation4], %s288_s27, %s288_s27, %s289_s28   ;;  %v105_v25 = vsel %vm95_vm3, %v77_v7, 0.0  ;;  %v106_v26 = vsel %vm96_vm4, %v101_v13, 0.0  ;;  %vm97_vm5 = vcmp.eq.s32.totalorder %v90_v23, 1  ;;  %vm98_vm6 = vcmp.eq.s32.totalorder %v94_v24, 1 }
  0x4a   :  { %v113_v27 = vcombine.low %v105_v25, %v106_v26  ;;  %v107_v28 = vsel %vm97_vm5, %v78_v10, 0.0  ;;  %v108_v29 = vsel %vm98_vm6, %v102_v18, 0.0  ;;  %s256_s15 = scalar_lea.vmem %s137_s5, 256  ;;  %p261_p5 = scmp.lt.s32.totalorder %s137_s5, %s137_s5 }
  0x4b   :  { %v114_v30 = vcombine.low %v107_v28, %v108_v29  ;;  %p257_p4 = scmp.ne.s32.totalorder %s137_s5, %s256_s15  ;;  %p262_p6 = scmp.lt.s32.totalorder %s256_s15, %s256_s15 }
  0x4c   :  { %117 = vst [vmem:[#allocation9] sm:$0xff] %v113_v27 }
  0x4d   :  { %118 = vst [vmem:[#allocation9 + $0x8] sm:$0xff] %v114_v30  ;;  %p263_p7 = por %p262_p6, %p261_p5 }
  0x4f   :  { %p264_p8 = pnand %p263_p7, %p257_p4 }
  0x51   :  { %267 = shalt.err (!%p264_p8)
}
  0x52   :  { %s268_s27 = scalar_lea.hbm %s416_s4, 256 }
  0x53   :  { %p269_p9 = scmp.ne.s32.totalorder %s416_s4, %s268_s27  ;;  %p272_p10 = scmp.lt.u32.totalorder %s268_s27, %s416_s4 }
  0x55   :  { %p274_p11 = pnand %p272_p10, %p269_p9 }
  0x57   :  { %277 = shalt.err (!%p274_p11)
}
  0x58   :  { %142 = dma.vmem_to_hbm [thread:$0]  %s137_s5, 256, %s416_s4, [#allocation10], %s291_s0, %s291_s0, %s292_s18  }
  0x59   :  { %282 = dma.done.wait [#allocation4], 64  }
  0x5a   :  { %283 = vsyncadd [#allocation4], 4294967232 }
  0x5b   :  { %284 = dma.done.wait [#allocation10], 256  }
  0x5c   :  { %285 = vsyncadd [#allocation10], 4294967040 }
  0x5d   :  { %149 = vsyncpa [#allocation3], 1 }
  0x5e   :  { %150 = vsyncpa [#allocation6], 1 }
  0x5f   :  { %151 = vsyncpa [#allocation4], 1 }
  0x60   :  { %152 = vsyncpa [#allocation10], 1 }

</bundles_post_ra>
